<compile_context>
chip_gen: v7x
topology: tpu7x:2x2x1
jax: 0.10.0
libtpu: 0.0.40
codegen_flags: <defaults>
</compile_context>

<pallas_src>
import functools

import jax
import jax.numpy as jnp
from jax.experimental import pallas as pl
from jax.experimental.pallas import tpu as pltpu

LN_EPS = 1e-5  # torch.nn.LayerNorm default


def node_model_kernel(grp_ref, eblk_ref, first_ref, last_ref, valid_ref,
                      x_ref, eaT_ref, col_ref,
                      w1x_ref, w1s_ref, b1_ref, gamma_ref, beta_ref, a_ref,
                      w2_ref, b2_ref, out_ref, scat_acc):
    """Flattened grid over (node-tile, edge-block) work steps.

    scat_acc: (H, TN) f32 accumulator, lane-dense; init on the first step of a
    group, consumed (fused MLP) on the last step of a group.
    """
    s = pl.program_id(0)
    TN = out_ref.shape[0]
    TE = eaT_ref.shape[1]

    # ---- init accumulator on the first step of this node-tile group ----
    @pl.when(first_ref[s] == 1)
    def _():
        scat_acc[...] = jnp.zeros_like(scat_acc)

    # ---- partial scatter_sum: (H, TE) x (TN, TE)^T -> (H, TN) ----
    @pl.when(valid_ref[s] == 1)
    def _():
        n0 = grp_ref[s] * TN
        node_ids = jax.lax.broadcasted_iota(jnp.int32, (TN, TE), 0) + n0
        # col block is lane-dense (1, TE); broadcast compare along sublanes.
        onehot = (node_ids == col_ref[...]).astype(eaT_ref.dtype)      # (TN, TE)
        scat_acc[...] += jax.lax.dot_general(
            eaT_ref[...], onehot,
            dimension_numbers=(((1,), (1,)), ((), ())),                # contract TE
            preferred_element_type=jnp.float32)                        # (H, TN)

    # ---- finalize on the last step of this group: fused MLP ----
    @pl.when(last_ref[s] == 1)
    def _():
        # Linear(2H, 2H) without concat: split weight, two matmuls.
        h = jnp.dot(x_ref[...], w1x_ref[...],
                    preferred_element_type=jnp.float32)                # (TN, 2H)
        h = h + jax.lax.dot_general(
            scat_acc[...], w1s_ref[...],
            dimension_numbers=(((0,), (0,)), ((), ())),                # contract H
            preferred_element_type=jnp.float32)
        h = h + b1_ref[...]

        # LayerNorm (two-pass statistics for numerical robustness).
        m = jnp.mean(h, axis=-1, keepdims=True)
        c = h - m
        var = jnp.mean(c * c, axis=-1, keepdims=True)
        hn = c * jax.lax.rsqrt(var + LN_EPS)
        hn = hn * gamma_ref[...] + beta_ref[...]

        # PReLU (single shared slope, scalar from SMEM).
        slope = a_ref[0]
        act = jnp.where(hn >= 0, hn, slope * hn)

        # Linear(2H, H), weight pre-transposed.
        out = jnp.dot(act, w2_ref[...],
                      preferred_element_type=jnp.float32) + b2_ref[...]
        out_ref[...] = out.astype(out_ref.dtype)


def _round_up(v, m):
    return (v + m - 1) // m * m


@functools.partial(jax.jit, static_argnames=("tn", "te", "scatter_dtype"))
def node_model_pallas(x, edge_attr, col, params, *, tn=512, te=2048,
                      scatter_dtype=jnp.bfloat16):
    """x: (N, H) f32; edge_attr: (E, H) f32; col: (E,) int in [0, N).

    params = (w1, b1, gamma, beta, a, w2, b2) in PyTorch layout
    (weights are (out_features, in_features))."""
    N, H = x.shape
    E = edge_attr.shape[0]
    H2 = 2 * H

    w1, b1, gamma, beta, a, w2, b2 = params
    # Pre-transpose + split weights in the wrapper (constant-folded by XLA):
    #   h = x @ W1[:, :H].T + scat @ W1[:, H:].T + b1
    w1x_t = jnp.transpose(w1[:, :H])          # (H, 2H)
    w1s_t = jnp.transpose(w1[:, H:])          # (H, 2H)
    w2_t = jnp.transpose(w2)                  # (2H, H)
    b1 = b1.reshape(1, H2)
    gamma = gamma.reshape(1, H2)
    beta = beta.reshape(1, H2)
    b2 = b2.reshape(1, H)
    a = a.reshape(1).astype(jnp.float32)      # PReLU slope -> SMEM scalar

    # Tile sizes: node tiles multiples of 8 (sublane), edge tiles multiples of
    # 128 (lane-dense col / eaT blocks).
    TN = min(_round_up(tn, 8), _round_up(N, 8))
    TE = min(_round_up(te, 128), _round_up(E, 128))
    Np = _round_up(N, TN)
    Ep = _round_up(E, TE)
    n_tiles = Np // TN
    e_blocks = Ep // TE
    # Each node-tile group visits at most (its exclusive edge blocks + 1
    # shared boundary block); total work steps <= e_blocks + n_tiles (static).
    max_steps = e_blocks + n_tiles

    # ---- sort edges by destination node; pad; lane-dense layouts ----
    col_i = col.astype(jnp.int32)
    order = jnp.argsort(col_i)
    col_s = jnp.take(col_i, order)
    ea_s = jnp.take(edge_attr, order, axis=0)
    # Padded edges get col = Np (matches no node id) -> dropped.
    col_p = jnp.pad(col_s, (0, Ep - E), constant_values=Np)
    ea_p = jnp.pad(ea_s, ((0, Ep - E), (0, 0)))
    eaT = jnp.transpose(ea_p).astype(scatter_dtype)   # (H, Ep), lane = edges
    col2d = col_p.reshape(1, Ep)                      # (1, Ep),  lane = edges

    x_p = jnp.pad(x, ((0, Np - N), (0, 0))) if Np != N else x

    # ---- per-step scalar-prefetch metadata ----
    bounds = jnp.arange(n_tiles + 1, dtype=jnp.int32) * TN
    edge_bnd = jnp.searchsorted(col_p, bounds, side="left").astype(jnp.int32)
    starts, ends = edge_bnd[:-1], edge_bnd[1:]                 # per node tile
    start_blk = jnp.minimum(starts // TE, e_blocks - 1)
    end_blk = (ends + TE - 1) // TE
    blocks_per = jnp.maximum(end_blk - start_blk, 1).astype(jnp.int32)

    cum = jnp.cumsum(blocks_per).astype(jnp.int32)             # (n_tiles,)
    cum0 = jnp.concatenate([jnp.zeros((1,), jnp.int32), cum])  # (n_tiles+1,)
    steps = jnp.arange(max_steps, dtype=jnp.int32)
    g = jnp.searchsorted(cum, steps, side="right").astype(jnp.int32)
    valid = g < n_tiles                                        # real vs padding step
    g_c = jnp.minimum(g, n_tiles - 1)
    j = steps - jnp.take(cum0, g_c)                            # pos within group
    blk_of_grp = jnp.take(blocks_per, g_c)

    step_group = g_c
    # Padding steps repeat the last real block -> their DMAs are elided.
    step_eblk = (jnp.take(start_blk, g_c)
                 + jnp.where(valid, j, blk_of_grp - 1)).astype(jnp.int32)
    step_first = (valid & (j == 0)).astype(jnp.int32)
    step_last = (valid & (j == blk_of_grp - 1)).astype(jnp.int32)
    step_valid = valid.astype(jnp.int32)

    # ---- index maps (prefetch refs arrive positionally after grid index) ----
    def node_map(s, grp, eblk, fst, lst, vld):
        return (grp[s], 0)

    def edge_map(s, grp, eblk, fst, lst, vld):
        return (0, eblk[s])

    def const_map(s, grp, eblk, fst, lst, vld):
        return (0, 0)

    flops = (2.0 * max_steps * TE * TN * H      # sorted scatter matmuls
             + 2.0 * Np * H2 * H2               # Linear(2H, 2H)
             + 2.0 * Np * H2 * H)               # Linear(2H, H)
    bytes_accessed = (4 * x_p.size
                      + eaT.size * eaT.dtype.itemsize
                      + 4 * col2d.size
                      + 4 * Np * H
                      + 4 * (w1x_t.size + w1s_t.size + w2_t.size
                             + b1.size + gamma.size + beta.size + b2.size
                             + a.size)
                      + 4 * 5 * max_steps)

    grid_spec = pltpu.PrefetchScalarGridSpec(
        num_scalar_prefetch=5,
        grid=(max_steps,),
        in_specs=[
            pl.BlockSpec((TN, H), node_map),      # x
            pl.BlockSpec((H, TE), edge_map),      # edge_attr^T (lane-dense)
            pl.BlockSpec((1, TE), edge_map),      # col (lane-dense int32)
            pl.BlockSpec((H, H2), const_map),     # W1_x^T (resident)
            pl.BlockSpec((H, H2), const_map),     # W1_s^T
            pl.BlockSpec((1, H2), const_map),     # b1
            pl.BlockSpec((1, H2), const_map),     # gamma
            pl.BlockSpec((1, H2), const_map),     # beta
            pl.BlockSpec(memory_space=pltpu.MemorySpace.SMEM),  # PReLU slope
            pl.BlockSpec((H2, H), const_map),     # W2^T
            pl.BlockSpec((1, H), const_map),      # b2
        ],
        out_specs=pl.BlockSpec((TN, H), node_map),
        scratch_shapes=[pltpu.VMEM((H, TN), jnp.float32)],   # scatter accumulator
    )

    out_p = pl.pallas_call(
        node_model_kernel,
        out_shape=jax.ShapeDtypeStruct((Np, H), jnp.float32),
        grid_spec=grid_spec,
        compiler_params=pltpu.CompilerParams(
            dimension_semantics=("arbitrary",),
            vmem_limit_bytes=32 * 1024 * 1024,
        ),
        cost_estimate=pl.CostEstimate(
            flops=int(flops),
            transcendentals=int(Np),
            bytes_accessed=int(bytes_accessed),
        ),
    )(step_group, step_eblk, step_first, step_last, step_valid,
      x_p, eaT, col2d, w1x_t, w1s_t, b1, gamma, beta, a, w2_t, b2)

    return out_p[:N] if Np != N else out_p


def node_model_ref(x, edge_attr, col, params):
    """Plain-JAX reference of the PyTorch forward."""
    w1, b1, gamma, beta, a, w2, b2 = params
    N = x.shape[0]
    scat = jax.ops.segment_sum(edge_attr, col, num_segments=N)
    cat = jnp.concatenate([x, scat], axis=1)
    h = cat @ w1.T + b1
    mean = jnp.mean(h, axis=-1, keepdims=True)
    var = jnp.mean((h - mean) ** 2, axis=-1, keepdims=True)
    hn = (h - mean) / jnp.sqrt(var + LN_EPS)
    hn = hn * gamma + beta
    act = jnp.where(hn >= 0, hn, a * hn)
    return act @ w2.T + b2


def init_params(key, n_hidden):
    """Deterministic synthetic init matching node_mlp_2 shapes.
    (node_mlp_1 is defined in __init__ but unused in forward.)"""
    H2 = 2 * n_hidden
    k1, k2, _, _, k5, k6 = jax.random.split(key, 6)
    w1 = jax.random.normal(k1, (H2, H2), jnp.float32) * (1.0 / jnp.sqrt(H2))
    b1 = jax.random.normal(k2, (H2,), jnp.float32) * 0.01
    gamma = jnp.ones((H2,), jnp.float32)
    beta = jnp.zeros((H2,), jnp.float32)
    a = jnp.array(0.25, jnp.float32)  # torch PReLU default
    w2 = jax.random.normal(k5, (n_hidden, H2), jnp.float32) * (1.0 / jnp.sqrt(H2))
    b2 = jax.random.normal(k6, (n_hidden,), jnp.float32) * 0.01
    return (w1, b1, gamma, beta, a, w2, b2)


if __name__ == "__main__":
    n_hidden = 32
    N = 20           # nodes (not tile-aligned -> exercises node padding)
    E = 300          # edges (not tile-aligned -> exercises edge padding)

    key = jax.random.PRNGKey(0)
    kx, ke, kc, kp = jax.random.split(key, 4)

    x = jax.random.normal(kx, (N, n_hidden), jnp.float32)
    edge_attr = jax.random.normal(ke, (E, n_hidden), jnp.float32)
    # edge_index = (row, col); only col is used by the forward pass.
    col = jax.random.randint(kc, (E,), 0, N, jnp.int32)
    params = init_params(kp, n_hidden)

    ref = node_model_ref(x, edge_attr, col, params)

    # Small tiles so the demo exercises multiple node-tile groups, shared edge
    # blocks across group boundaries, first/last flags and padding steps.
    # 1) exact path: f32 scatter inputs, tight tolerance.
    out32 = node_model_pallas(x, edge_attr, col, params,
                              tn=8, te=128, scatter_dtype=jnp.float32)
    out32 = jax.block_until_ready(out32)
    assert out32.shape == (N, n_hidden)
    assert jnp.allclose(out32, ref, atol=1e-4, rtol=1e-4), "f32 path mismatch"

    # 2) default fast path: bf16 edge features on the MXU, f32 accumulate.
    out16 = node_model_pallas(x, edge_attr, col, params, tn=8, te=128)
    out16 = jax.block_until_ready(out16)
    assert out16.shape == (N, n_hidden)
    assert jnp.allclose(out16, ref, atol=5e-2, rtol=5e-2), "bf16 path mismatch"

    print("KERNEL_OK")
</pallas_src>

<mosaic_0001>
module attributes {stable_mosaic.version = 11 : i64} {
  func.func @node_model_kernel(%arg0: i32, %arg1: memref<6xi32, #tpu.memory_space<smem>>, %arg2: memref<6xi32, #tpu.memory_space<smem>>, %arg3: memref<6xi32, #tpu.memory_space<smem>>, %arg4: memref<6xi32, #tpu.memory_space<smem>>, %arg5: memref<6xi32, #tpu.memory_space<smem>>, %arg6: memref<8x32xf32, #tpu.memory_space<vmem>>, %arg7: memref<32x128xf32, #tpu.memory_space<vmem>>, %arg8: memref<1x128xi32, #tpu.memory_space<vmem>>, %arg9: memref<32x64xf32, #tpu.memory_space<vmem>>, %arg10: memref<32x64xf32, #tpu.memory_space<vmem>>, %arg11: memref<1x64xf32, #tpu.memory_space<vmem>>, %arg12: memref<1x64xf32, #tpu.memory_space<vmem>>, %arg13: memref<1x64xf32, #tpu.memory_space<vmem>>, %arg14: memref<1xf32, #tpu.memory_space<smem>>, %arg15: memref<64x32xf32, #tpu.memory_space<vmem>>, %arg16: memref<1x32xf32, #tpu.memory_space<vmem>>, %arg17: memref<8x32xf32, #tpu.memory_space<vmem>>, %arg18: memref<32x8xf32, #tpu.memory_space<vmem>>) attributes {dimension_semantics = [#tpu.dimension_semantics<arbitrary>], iteration_bounds = array<i64: 6>, scalar_prefetch = 5 : i64, scratch_operands = 1 : i64, tpu.core_type = #tpu.core_type<tc>, window_params = [{transform_indices = @transform_0, window_bounds = array<i64: 8, 32>}, {transform_indices = @transform_1, window_bounds = array<i64: 32, 128>}, {transform_indices = @transform_2, window_bounds = array<i64: 1, 128>}, {pipeline_mode = #tpu.pipeline_mode<synchronous>, transform_indices = @transform_3, window_bounds = array<i64: 32, 64>}, {pipeline_mode = #tpu.pipeline_mode<synchronous>, transform_indices = @transform_4, window_bounds = array<i64: 32, 64>}, {pipeline_mode = #tpu.pipeline_mode<synchronous>, transform_indices = @transform_5, window_bounds = array<i64: 1, 64>}, {pipeline_mode = #tpu.pipeline_mode<synchronous>, transform_indices = @transform_6, window_bounds = array<i64: 1, 64>}, {pipeline_mode = #tpu.pipeline_mode<synchronous>, transform_indices = @transform_7, window_bounds = array<i64: 1, 64>}, {transform_indices = @transform_8, window_bounds = array<i64: 1>}, {pipeline_mode = #tpu.pipeline_mode<synchronous>, transform_indices = @transform_9, window_bounds = array<i64: 64, 32>}, {pipeline_mode = #tpu.pipeline_mode<synchronous>, transform_indices = @transform_10, window_bounds = array<i64: 1, 32>}, {transform_indices = @transform_11, window_bounds = array<i64: 8, 32>}]} {
    %0 = arith.index_cast %arg0 : i32 to index
    %1 = memref.load %arg3[%0] : memref<6xi32, #tpu.memory_space<smem>>
    %c1_i32 = arith.constant 1 : i32
    %2 = arith.cmpi eq, %1, %c1_i32 : i32
    %3 = arith.extui %2 : i1 to i32
    %c0_i32 = arith.constant 0 : i32
    %4 = arith.cmpi ne, %3, %c0_i32 : i32
    scf.if %4 {
      %cst = arith.constant 0.000000e+00 : f32
      %15 = vector.broadcast %cst : f32 to vector<32x8xf32>
      %c0 = arith.constant 0 : index
      %c0_4 = arith.constant 0 : index
      %16 = vector.load %arg18[%c0, %c0_4] : memref<32x8xf32, #tpu.memory_space<vmem>>, vector<32x8xf32>
      tpu.vector_store %arg18[%c0, %c0_4], %15 {strides = array<i32>} : memref<32x8xf32, #tpu.memory_space<vmem>>, vector<32x8xf32>,
    } else {
    }
    %5 = arith.index_cast %arg0 : i32 to index
    %6 = memref.load %arg5[%5] : memref<6xi32, #tpu.memory_space<smem>>
    %c1_i32_0 = arith.constant 1 : i32
    %7 = arith.cmpi eq, %6, %c1_i32_0 : i32
    %8 = arith.extui %7 : i1 to i32
    %c0_i32_1 = arith.constant 0 : i32
    %9 = arith.cmpi ne, %8, %c0_i32_1 : i32
    scf.if %9 {
      %15 = arith.index_cast %arg0 : i32 to index
      %16 = memref.load %arg1[%15] : memref<6xi32, #tpu.memory_space<smem>>
      %c8_i32 = arith.constant 8 : i32
      %17 = arith.muli %16, %c8_i32 : i32
      %18 = tpu.iota {dimensions = array<i32: 0>} : vector<8x128xi32>
      %19 = vector.broadcast %17 : i32 to vector<8x128xi32>
      %20 = arith.addi %18, %19 : vector<8x128xi32>
      %c0 = arith.constant 0 : index
      %c0_4 = arith.constant 0 : index
      %21 = vector.load %arg8[%c0, %c0_4] : memref<1x128xi32, #tpu.memory_space<vmem>>, vector<1x128xi32>
      %22 = vector.broadcast %21 : vector<1x128xi32> to vector<8x128xi32>
      %23 = arith.cmpi eq, %20, %22 : vector<8x128xi32>
      %24 = arith.extui %23 : vector<8x128xi1> to vector<8x128xi32>
      %25 = arith.sitofp %24 : vector<8x128xi32> to vector<8x128xf32>
      %c0_5 = arith.constant 0 : index
      %c0_6 = arith.constant 0 : index
      %26 = vector.load %arg18[%c0_5, %c0_6] : memref<32x8xf32, #tpu.memory_space<vmem>>, vector<32x8xf32>
      %c0_7 = arith.constant 0 : index
      %c0_8 = arith.constant 0 : index
      %27 = vector.load %arg7[%c0_7, %c0_8] : memref<32x128xf32, #tpu.memory_space<vmem>>, vector<32x128xf32>
      %cst = arith.constant dense<0.000000e+00> : vector<32x8xf32>
      %28 = tpu.matmul %27, %25, %cst {dimension_numbers = #tpu.dot_dimension_numbers<[1], [1], [0], [0], [0, 0, 1, 0], [], []>} : vector<32x128xf32>, vector<8x128xf32>, vector<32x8xf32> -> vector<32x8xf32>
      %29 = arith.addf %26, %28 : vector<32x8xf32>
      %c0_9 = arith.constant 0 : index
      %c0_10 = arith.constant 0 : index
      %30 = vector.load %arg18[%c0_9, %c0_10] : memref<32x8xf32, #tpu.memory_space<vmem>>, vector<32x8xf32>
      tpu.vector_store %arg18[%c0_9, %c0_10], %29 {strides = array<i32>} : memref<32x8xf32, #tpu.memory_space<vmem>>, vector<32x8xf32>,
    } else {
    }
    %10 = arith.index_cast %arg0 : i32 to index
    %11 = memref.load %arg4[%10] : memref<6xi32, #tpu.memory_space<smem>>
    %c1_i32_2 = arith.constant 1 : i32
    %12 = arith.cmpi eq, %11, %c1_i32_2 : i32
    %13 = arith.extui %12 : i1 to i32
    %c0_i32_3 = arith.constant 0 : i32
    %14 = arith.cmpi ne, %13, %c0_i32_3 : i32
    scf.if %14 {
      %c0 = arith.constant 0 : index
      %c0_4 = arith.constant 0 : index
      %15 = vector.load %arg6[%c0, %c0_4] : memref<8x32xf32, #tpu.memory_space<vmem>>, vector<8x32xf32>
      %c0_5 = arith.constant 0 : index
      %c0_6 = arith.constant 0 : index
      %16 = vector.load %arg9[%c0_5, %c0_6] : memref<32x64xf32, #tpu.memory_space<vmem>>, vector<32x64xf32>
      %cst = arith.constant dense<0.000000e+00> : vector<8x64xf32>
      %17 = tpu.matmul %15, %16, %cst {dimension_numbers = #tpu.dot_dimension_numbers<[1], [0], [0], [1], [0, 0, 1, 1], [], []>} : vector<8x32xf32>, vector<32x64xf32>, vector<8x64xf32> -> vector<8x64xf32>
      %c0_7 = arith.constant 0 : index
      %c0_8 = arith.constant 0 : index
      %18 = vector.load %arg18[%c0_7, %c0_8] : memref<32x8xf32, #tpu.memory_space<vmem>>, vector<32x8xf32>
      %c0_9 = arith.constant 0 : index
      %c0_10 = arith.constant 0 : index
      %19 = vector.load %arg10[%c0_9, %c0_10] : memref<32x64xf32, #tpu.memory_space<vmem>>, vector<32x64xf32>
      %cst_11 = arith.constant dense<0.000000e+00> : vector<8x64xf32>
      %20 = tpu.matmul %18, %19, %cst_11 {dimension_numbers = #tpu.dot_dimension_numbers<[0], [0], [1], [1], [0, 1, 1, 1], [], []>} : vector<32x8xf32>, vector<32x64xf32>, vector<8x64xf32> -> vector<8x64xf32>
      %21 = arith.addf %17, %20 : vector<8x64xf32>
      %c0_12 = arith.constant 0 : index
      %c0_13 = arith.constant 0 : index
      %22 = vector.load %arg11[%c0_12, %c0_13] : memref<1x64xf32, #tpu.memory_space<vmem>>, vector<1x64xf32>
      %23 = vector.broadcast %22 : vector<1x64xf32> to vector<8x64xf32>
      %24 = arith.addf %21, %23 : vector<8x64xf32>
      %cst_14 = arith.constant dense<0.000000e+00> : vector<8xf32>
      %25 = vector.multi_reduction <add>, %24, %cst_14 [1] : vector<8x64xf32> to vector<8xf32>
      %26 = vector.shape_cast %25 : vector<8xf32> to vector<8x1xf32>
      %cst_15 = arith.constant 6.400000e+01 : f32
      %27 = vector.broadcast %cst_15 : f32 to vector<8x1xf32>
      %28 = arith.divf %26, %27 : vector<8x1xf32>
      %29 = vector.broadcast %28 : vector<8x1xf32> to vector<8x64xf32>
      %30 = arith.subf %24, %29 : vector<8x64xf32>
      %31 = arith.mulf %30, %30 : vector<8x64xf32>
      %cst_16 = arith.constant dense<0.000000e+00> : vector<8xf32>
      %32 = vector.multi_reduction <add>, %31, %cst_16 [1] : vector<8x64xf32> to vector<8xf32>
      %33 = vector.shape_cast %32 : vector<8xf32> to vector<8x1xf32>
      %cst_17 = arith.constant 6.400000e+01 : f32
      %34 = vector.broadcast %cst_17 : f32 to vector<8x1xf32>
      %35 = arith.divf %33, %34 : vector<8x1xf32>
      %cst_18 = arith.constant 9.99999974E-6 : f32
      %36 = vector.broadcast %cst_18 : f32 to vector<8x1xf32>
      %37 = arith.addf %35, %36 : vector<8x1xf32>
      %38 = math.rsqrt %37 : vector<8x1xf32>
      %39 = vector.broadcast %38 : vector<8x1xf32> to vector<8x64xf32>
      %40 = arith.mulf %30, %39 : vector<8x64xf32>
      %c0_19 = arith.constant 0 : index
      %c0_20 = arith.constant 0 : index
      %41 = vector.load %arg12[%c0_19, %c0_20] : memref<1x64xf32, #tpu.memory_space<vmem>>, vector<1x64xf32>
      %42 = vector.broadcast %41 : vector<1x64xf32> to vector<8x64xf32>
      %43 = arith.mulf %40, %42 : vector<8x64xf32>
      %c0_21 = arith.constant 0 : index
      %c0_22 = arith.constant 0 : index
      %44 = vector.load %arg13[%c0_21, %c0_22] : memref<1x64xf32, #tpu.memory_space<vmem>>, vector<1x64xf32>
      %45 = vector.broadcast %44 : vector<1x64xf32> to vector<8x64xf32>
      %46 = arith.addf %43, %45 : vector<8x64xf32>
      %c0_23 = arith.constant 0 : index
      %47 = memref.load %arg14[%c0_23] : memref<1xf32, #tpu.memory_space<smem>>
      %cst_24 = arith.constant 0.000000e+00 : f32
      %48 = vector.broadcast %cst_24 : f32 to vector<8x64xf32>
      %49 = arith.cmpf oge, %46, %48 : vector<8x64xf32>
      %50 = vector.broadcast %47 : f32 to vector<8x64xf32>
      %51 = arith.mulf %50, %46 : vector<8x64xf32>
      %52 = arith.select %49, %46, %51 : vector<8x64xi1>, vector<8x64xf32>
      %c0_25 = arith.constant 0 : index
      %c0_26 = arith.constant 0 : index
      %53 = vector.load %arg15[%c0_25, %c0_26] : memref<64x32xf32, #tpu.memory_space<vmem>>, vector<64x32xf32>
      %cst_27 = arith.constant dense<0.000000e+00> : vector<8x32xf32>
      %54 = tpu.matmul %52, %53, %cst_27 {dimension_numbers = #tpu.dot_dimension_numbers<[1], [0], [0], [1], [0, 0, 1, 1], [], []>} : vector<8x64xf32>, vector<64x32xf32>, vector<8x32xf32> -> vector<8x32xf32>
      %c0_28 = arith.constant 0 : index
      %c0_29 = arith.constant 0 : index
      %55 = vector.load %arg16[%c0_28, %c0_29] : memref<1x32xf32, #tpu.memory_space<vmem>>, vector<1x32xf32>
      %56 = vector.broadcast %55 : vector<1x32xf32> to vector<8x32xf32>
      %57 = arith.addf %54, %56 : vector<8x32xf32>
      %c0_30 = arith.constant 0 : index
      %c0_31 = arith.constant 0 : index
      %58 = vector.load %arg17[%c0_30, %c0_31] : memref<8x32xf32, #tpu.memory_space<vmem>>, vector<8x32xf32>
      tpu.vector_store %arg17[%c0_30, %c0_31], %57 {strides = array<i32>} : memref<8x32xf32, #tpu.memory_space<vmem>>, vector<8x32xf32>,
    } else {
    }
    return
  }
  func.func @transform_0(%arg0: i32, %arg1: memref<6xi32, #tpu.memory_space<smem>>, %arg2: memref<6xi32, #tpu.memory_space<smem>>, %arg3: memref<6xi32, #tpu.memory_space<smem>>, %arg4: memref<6xi32, #tpu.memory_space<smem>>, %arg5: memref<6xi32, #tpu.memory_space<smem>>) -> (i32, i32) {
    %0 = arith.index_cast %arg0 : i32 to index
    %1 = memref.load %arg1[%0] : memref<6xi32, #tpu.memory_space<smem>>
    %c0_i32 = arith.constant 0 : i32
    %c0_i32_0 = arith.constant 0 : i32
    return %1, %c0_i32 : i32, i32
  }
  func.func @transform_1(%arg0: i32, %arg1: memref<6xi32, #tpu.memory_space<smem>>, %arg2: memref<6xi32, #tpu.memory_space<smem>>, %arg3: memref<6xi32, #tpu.memory_space<smem>>, %arg4: memref<6xi32, #tpu.memory_space<smem>>, %arg5: memref<6xi32, #tpu.memory_space<smem>>) -> (i32, i32) {
    %0 = arith.index_cast %arg0 : i32 to index
    %1 = memref.load %arg2[%0] : memref<6xi32, #tpu.memory_space<smem>>
    %c0_i32 = arith.constant 0 : i32
    %c0_i32_0 = arith.constant 0 : i32
    return %c0_i32, %1 : i32, i32
  }
  func.func @transform_2(%arg0: i32, %arg1: memref<6xi32, #tpu.memory_space<smem>>, %arg2: memref<6xi32, #tpu.memory_space<smem>>, %arg3: memref<6xi32, #tpu.memory_space<smem>>, %arg4: memref<6xi32, #tpu.memory_space<smem>>, %arg5: memref<6xi32, #tpu.memory_space<smem>>) -> (i32, i32) {
    %0 = arith.index_cast %arg0 : i32 to index
    %1 = memref.load %arg2[%0] : memref<6xi32, #tpu.memory_space<smem>>
    %c0_i32 = arith.constant 0 : i32
    %c0_i32_0 = arith.constant 0 : i32
    return %c0_i32, %1 : i32, i32
  }
  func.func @transform_3(%arg0: i32, %arg1: memref<6xi32, #tpu.memory_space<smem>>, %arg2: memref<6xi32, #tpu.memory_space<smem>>, %arg3: memref<6xi32, #tpu.memory_space<smem>>, %arg4: memref<6xi32, #tpu.memory_space<smem>>, %arg5: memref<6xi32, #tpu.memory_space<smem>>) -> (i32, i32) {
    %c0_i32 = arith.constant 0 : i32
    %c0_i32_0 = arith.constant 0 : i32
    %c0_i32_1 = arith.constant 0 : i32
    return %c0_i32, %c0_i32_0 : i32, i32
  }
  func.func @transform_4(%arg0: i32, %arg1: memref<6xi32, #tpu.memory_space<smem>>, %arg2: memref<6xi32, #tpu.memory_space<smem>>, %arg3: memref<6xi32, #tpu.memory_space<smem>>, %arg4: memref<6xi32, #tpu.memory_space<smem>>, %arg5: memref<6xi32, #tpu.memory_space<smem>>) -> (i32, i32) {
    %c0_i32 = arith.constant 0 : i32
    %c0_i32_0 = arith.constant 0 : i32
    %c0_i32_1 = arith.constant 0 : i32
    return %c0_i32, %c0_i32_0 : i32, i32
  }
  func.func @transform_5(%arg0: i32, %arg1: memref<6xi32, #tpu.memory_space<smem>>, %arg2: memref<6xi32, #tpu.memory_space<smem>>, %arg3: memref<6xi32, #tpu.memory_space<smem>>, %arg4: memref<6xi32, #tpu.memory_space<smem>>, %arg5: memref<6xi32, #tpu.memory_space<smem>>) -> (i32, i32) {
    %c0_i32 = arith.constant 0 : i32
    %c0_i32_0 = arith.constant 0 : i32
    %c0_i32_1 = arith.constant 0 : i32
    return %c0_i32, %c0_i32_0 : i32, i32
  }
  func.func @transform_6(%arg0: i32, %arg1: memref<6xi32, #tpu.memory_space<smem>>, %arg2: memref<6xi32, #tpu.memory_space<smem>>, %arg3: memref<6xi32, #tpu.memory_space<smem>>, %arg4: memref<6xi32, #tpu.memory_space<smem>>, %arg5: memref<6xi32, #tpu.memory_space<smem>>) -> (i32, i32) {
    %c0_i32 = arith.constant 0 : i32
    %c0_i32_0 = arith.constant 0 : i32
    %c0_i32_1 = arith.constant 0 : i32
    return %c0_i32, %c0_i32_0 : i32, i32
  }
  func.func @transform_7(%arg0: i32, %arg1: memref<6xi32, #tpu.memory_space<smem>>, %arg2: memref<6xi32, #tpu.memory_space<smem>>, %arg3: memref<6xi32, #tpu.memory_space<smem>>, %arg4: memref<6xi32, #tpu.memory_space<smem>>, %arg5: memref<6xi32, #tpu.memory_space<smem>>) -> (i32, i32) {
    %c0_i32 = arith.constant 0 : i32
    %c0_i32_0 = arith.constant 0 : i32
    %c0_i32_1 = arith.constant 0 : i32
    return %c0_i32, %c0_i32_0 : i32, i32
  }
  func.func @transform_8(%arg0: i32, %arg1: memref<6xi32, #tpu.memory_space<smem>>, %arg2: memref<6xi32, #tpu.memory_space<smem>>, %arg3: memref<6xi32, #tpu.memory_space<smem>>, %arg4: memref<6xi32, #tpu.memory_space<smem>>, %arg5: memref<6xi32, #tpu.memory_space<smem>>) -> i32 {
    %c0_i32 = arith.constant 0 : i32
    %c0_i32_0 = arith.constant 0 : i32
    return %c0_i32 : i32
  }
  func.func @transform_9(%arg0: i32, %arg1: memref<6xi32, #tpu.memory_space<smem>>, %arg2: memref<6xi32, #tpu.memory_space<smem>>, %arg3: memref<6xi32, #tpu.memory_space<smem>>, %arg4: memref<6xi32, #tpu.memory_space<smem>>, %arg5: memref<6xi32, #tpu.memory_space<smem>>) -> (i32, i32) {
    %c0_i32 = arith.constant 0 : i32
    %c0_i32_0 = arith.constant 0 : i32
    %c0_i32_1 = arith.constant 0 : i32
    return %c0_i32, %c0_i32_0 : i32, i32
  }
  func.func @transform_10(%arg0: i32, %arg1: memref<6xi32, #tpu.memory_space<smem>>, %arg2: memref<6xi32, #tpu.memory_space<smem>>, %arg3: memref<6xi32, #tpu.memory_space<smem>>, %arg4: memref<6xi32, #tpu.memory_space<smem>>, %arg5: memref<6xi32, #tpu.memory_space<smem>>) -> (i32, i32) {
    %c0_i32 = arith.constant 0 : i32
    %c0_i32_0 = arith.constant 0 : i32
    %c0_i32_1 = arith.constant 0 : i32
    return %c0_i32, %c0_i32_0 : i32, i32
  }
  func.func @transform_11(%arg0: i32, %arg1: memref<6xi32, #tpu.memory_space<smem>>, %arg2: memref<6xi32, #tpu.memory_space<smem>>, %arg3: memref<6xi32, #tpu.memory_space<smem>>, %arg4: memref<6xi32, #tpu.memory_space<smem>>, %arg5: memref<6xi32, #tpu.memory_space<smem>>) -> (i32, i32) {
    %0 = arith.index_cast %arg0 : i32 to index
    %1 = memref.load %arg1[%0] : memref<6xi32, #tpu.memory_space<smem>>
    %c0_i32 = arith.constant 0 : i32
    %c0_i32_0 = arith.constant 0 : i32
    return %1, %c0_i32 : i32, i32
  }
}

</mosaic_0001>

<bundles_post_ra>
// kernel: custom-call
= control target key start
LH: loop header
LB: loop body
LE: loop exit
PB: predicated region body
PF: predicated region fallthrough
CT: control target
= control target key end

     0   :  { %s6_s0 = inlined_call_operand.vmem [shape: u32[4], index: 0, kind: output, shape index: {}]  }

// kernel: custom-call.2
= control target key start
LH: loop header
LB: loop body
LE: loop exit
PB: predicated region body
PF: predicated region fallthrough
CT: control target
= control target key end

     0   :  { %s6_s0 = inlined_call_operand.vmem [shape: u32[6], index: 0, kind: output, shape index: {}]  }

// kernel: node_model_pallas.1
= control target key start
LH: loop header
LB: loop body
LE: loop exit
PB: predicated region body
PF: predicated region fallthrough
CT: control target
= control target key end

     0   :  { %s1763_s0 = inlined_call_operand.vmem [shape: s32[6], index: 0, kind: input, shape index: {}]   ;;  %s1764_s5 = inlined_call_operand.vmem [shape: f32[24,32], index: 5, kind: input, shape index: {}]   ;;  %s1765_s6 = inlined_call_operand.vmem [shape: f32[32,384], index: 6, kind: input, shape index: {}]   ;;  %s1766_s7 = inlined_call_operand.vmem [shape: s32[1,384], index: 7, kind: input, shape index: {}]   ;;  %s1767_s8 = inlined_call_operand.vmem [shape: f32[32,64], index: 8, kind: input, shape index: {}]   ;;  %s1768_s9 = inlined_call_operand.vmem [shape: f32[32,64], index: 9, kind: input, shape index: {}]   ;;  %s1769_s10 = inlined_call_operand.vmem [shape: f32[1,64], index: 10, kind: input, shape index: {}]   ;;  %s1770_s11 = inlined_call_operand.vmem [shape: f32[1,64], index: 11, kind: input, shape index: {}]   ;;  %s1771_s12 = inlined_call_operand.vmem [shape: f32[1,64], index: 12, kind: input, shape index: {}]   ;;  %s1772_s14 = inlined_call_operand.vmem [shape: f32[64,32], index: 14, kind: input, shape index: {}]   ;;  %s1773_s15 = inlined_call_operand.vmem [shape: f32[1,32], index: 15, kind: input, shape index: {}]   ;;  %s1774_s16 = inlined_call_operand.hbm [shape: f32[24,32], index: 16, kind: output, shape index: {}]   ;;  %s1775_s1 = inlined_call_operand.vmem [shape: s32[6], index: 1, kind: input, shape index: {}]   ;;  %s1776_s2 = inlined_call_operand.vmem [shape: s32[6], index: 2, kind: input, shape index: {}]   ;;  %s1777_s3 = inlined_call_operand.vmem [shape: s32[6], index: 3, kind: input, shape index: {}]   ;;  %s1778_s4 = inlined_call_operand.vmem [shape: s32[6], index: 4, kind: input, shape index: {}]   ;;  %s1779_s13 = inlined_call_operand.<no memory space> [shape: f32[1], index: 13, kind: input, shape index: {}]  }
   0x1   :  { %1784 = sst [smem:[#allocation19_spill]] %s1763_s0  ;;  %s25_s26 = sshll.u32 %s1775_s1, 4  ;;  %s26_s26 = int_to_ptr.vmem [resolvable:$true] %s25_s26 }
   0x2   :  { %1785 = sst [smem:[#allocation20_spill]] %s1765_s6  ;;  %s1787_s23 = sld [smem:[#allocation19_spill]] }
   0x3   :  { %1786 = sst [smem:[#allocation21_spill]] %s1773_s15 }
   0x8   :  { %s21_s15 = sshll.u32 %s1787_s23, 4  ;;  %s22_s15 = int_to_ptr.vmem [resolvable:$true] %s21_s15 }
   0x9   :  { %s1268_s27 = scalar_lea.vmem %s22_s15, 16  ;;  %p1273_p1 = scmp.lt.s32.totalorder %s22_s15, %s22_s15 }
   0xa   :  { %p1269_p0 = scmp.ne.s32.totalorder %s22_s15, %s1268_s27  ;;  %p1274_p2 = scmp.lt.s32.totalorder %s1268_s27, %s1268_s27 }
   0xc   :  { %p1275_p3 = por %p1274_p2, %p1273_p1 }
   0xe   :  { %p1276_p4 = pnand %p1275_p3, %p1269_p0 }
  0x10   :  { %1279 = shalt.err (!%p1276_p4)  }
  0x11   :  { %s1410_s28 = smov [#allocation4]   ;;  %s1280_s29 = scalar_lea.vmem %s26_s26, 16 }
  0x12   :  { %24 = dma.vmem_to_smem %s22_s15, 16, %s1410_s28, [#allocation3] }
  0x13   :  { %p1281_p5 = scmp.ne.s32.totalorder %s26_s26, %s1280_s29  ;;  %p1285_p6 = scmp.lt.s32.totalorder %s26_s26, %s26_s26 }
  0x14   :  { %p1286_p7 = scmp.lt.s32.totalorder %s1280_s29, %s1280_s29 }
  0x16   :  { %p1287_p8 = por %p1286_p7, %p1285_p6 }
  0x18   :  { %p1288_p9 = pnand %p1287_p8, %p1281_p5 }
  0x1a   :  { %1291 = shalt.err (!%p1288_p9)  }
  0x1b   :  { %s1411_s30 = smov [#allocation5]   ;;  %s29_s17 = sshll.u32 %s1776_s2, 4  ;;  %s30_s17 = int_to_ptr.vmem [resolvable:$true] %s29_s17 }
  0x1c   :  { %28 = dma.vmem_to_smem %s26_s26, 16, %s1411_s30, [#allocation3] }
  0x1d   :  { %s33_s20 = sshll.u32 %s1777_s3, 4  ;;  %s1292_s21 = scalar_lea.vmem %s30_s17, 16  ;;  %s34_s20 = int_to_ptr.vmem [resolvable:$true] %s33_s20 }
  0x1e   :  { %p1293_p10 = scmp.ne.s32.totalorder %s30_s17, %s1292_s21  ;;  %p1297_p11 = scmp.lt.s32.totalorder %s30_s17, %s30_s17 }
  0x1f   :  { %p1298_p12 = scmp.lt.s32.totalorder %s1292_s21, %s1292_s21 }
  0x21   :  { %p1299_p13 = por %p1298_p12, %p1297_p11 }
  0x23   :  { %p1300_p0 = pnand %p1299_p13, %p1293_p10 }
  0x25   :  { %1303 = shalt.err (!%p1300_p0)  }
  0x26   :  { %s1412_s15 = smov [#allocation6]   ;;  %s1304_s22 = scalar_lea.vmem %s34_s20, 16 }
  0x27   :  { %32 = dma.vmem_to_smem %s30_s17, 16, %s1412_s15, [#allocation3] }
  0x28   :  { %p1305_p1 = scmp.ne.s32.totalorder %s34_s20, %s1304_s22  ;;  %p1309_p2 = scmp.lt.s32.totalorder %s34_s20, %s34_s20 }
  0x29   :  { %p1310_p3 = scmp.lt.s32.totalorder %s1304_s22, %s1304_s22 }
  0x2b   :  { %p1311_p4 = por %p1310_p3, %p1309_p2 }
  0x2d   :  { %p1312_p5 = pnand %p1311_p4, %p1305_p1 }
  0x2f   :  { %1315 = shalt.err (!%p1312_p5)  }
  0x30   :  { %s1413_s2 = smov [#allocation7]   ;;  %s37_s24 = sshll.u32 %s1778_s4, 4  ;;  %s38_s24 = int_to_ptr.vmem [resolvable:$true] %s37_s24 }
  0x31   :  { %36 = dma.vmem_to_smem %s34_s20, 16, %s1413_s2, [#allocation3] }
  0x32   :  { %41 = sst [smem:[#allocation9]] %s1779_s13  ;;  %s1316_s27 = scalar_lea.vmem %s38_s24, 16 }
  0x33   :  { %p1317_p6 = scmp.ne.s32.totalorder %s38_s24, %s1316_s27  ;;  %p1321_p7 = scmp.lt.s32.totalorder %s38_s24, %s38_s24 }
  0x34   :  { %p1322_p8 = scmp.lt.s32.totalorder %s1316_s27, %s1316_s27 }
  0x36   :  { %p1323_p9 = por %p1322_p8, %p1321_p7 }
  0x38   :  { %p1324_p10 = pnand %p1323_p9, %p1317_p6 }
  0x3a   :  { %1327 = shalt.err (!%p1324_p10)  }
  0x3b   :  { %s1414_s28 = smov [#allocation8]  }
  0x3c   :  { %40 = dma.vmem_to_smem %s38_s24, 16, %s1414_s28, [#allocation3] }
  0x3d   :  { %1380 = dma.done.wait [#allocation3], 80 }
  0x3e   :  { %1381 = vsyncadd [#allocation3], 4294967216 }
  0x3f   :  { %43 = sfence }
  0x40   :  { %44 = vsyncpa [#allocation12], 0 }
  0x41   :  { %46 = vsyncpa [#allocation12 + $0x1], 0  ;;  %s1524_s4 = smov 0   ;;  %s1526_s29 = smov 0  }
  0x42   :  { %s1528_s30 = smov 0   ;;  %s1530_s13 = smov 0  }
  0x43   :  { %s1532_s1 = smov 0   ;;  %s1534_s0 = smov 0  }
  0x44 LB: > { %s1555_s17 = sadd.s32 4294967295, %s1408_s0   ;;  %s1558_s18 = sadd.s32 1, %s1408_s0   ;;  %s1408_s0 = sphi %s1534_s0, %s1798_s0   ;;  %s1404_s1 = sphi %s1532_s1, %s1804_s1   ;;  %s1400_s13 = sphi %s1530_s13, %s1803_s13   ;;  %s1396_s30 = sphi %s1528_s30, %s1802_s30   ;;  %s1392_s29 = sphi %s1526_s29, %s1801_s29   ;;  %s1388_s4 = sphi %s1524_s4, %s1800_s4  }
  0x45   : > { %1788 = sst [smem:[#allocation16_spill]] %s1558_s18  ;;  %s1073_s20 = sadd.s32 4294967294, %s1408_s0  }
  0x46   : > { %s84_s19 = sld [smem:[#allocation5 + %s1408_s0]]  ;;  %p96_p11 = scmp.ne.s32.totalorder %s1404_s1, %s1400_s13 }
  0x47   : > { %s85_s21 = sld [smem:[#allocation5 + %s1558_s18]]  ;;  %p97_p12 = scmp.eq.s32.totalorder %s1408_s0, 0 }
  0x48   : > { %s308_s15 = sld [smem:[#allocation4 + %s1408_s0]]  ;;  %s89_s2 = sadd.s32 1, %s1404_s1 }
  0x49   : > { %s309_s22 = sld [smem:[#allocation4 + %s1558_s18]]  ;;  %p1569_p13 = por %p97_p12, %p96_p11 }
  0x4a   : > { %p323_p0 = scmp.ne.s32.totalorder %s1396_s30, %s1392_s29  ;;  %p324_p1 = scmp.eq.s32.totalorder %s1555_s17, 5 }
  0x4b   : > { %p329_p2 = scmp.ne.s32.totalorder %s1392_s29, %s1388_s4  ;;  %p330_p3 = scmp.eq.s32.totalorder %s1073_s20, 5 }
  0x4c   : > { %p1578_p4 = por %p324_p1, %p323_p0  ;;  %s313_s27 = sadd.s32 1, %s1396_s30 }
  0x4d   : > { %s86_s23 = ssub.s32 %s84_s19, %s85_s21  ;;  %p1582_p6 = por %p330_p3, %p329_p2 }
  0x4e   : > { %p87_p5 = scmp.eq.s32.totalorder %s86_s23, 0  ;;  %p1075_p8 = scmp.ge.s32.totalorder %s1408_s0, 6 }
  0x4f   : > { %s1791_s25 = scalar_select %p1582_p6, 1, 0 }
  0x50   : > { %s310_s26 = ssub.s32 %s308_s15, %s309_s22  ;;  %370 = sbr.rel (%p1075_p8) target bundleno = 99 (0x63), region = 48 }
  0x51   : > { %1792 = sst [smem:[#allocation17_spill]] %s1791_s25  ;;  %p311_p7 = scmp.eq.s32.totalorder %s310_s26, 0 }
  0x52   : > { %s1588_s28 = scalar_select %p87_p5, %s1404_s1, %s89_s2  }
  0x53   : > { %s1591_s18 = scalar_select %p311_p7, %s1396_s30, %s313_s27  }
  0x54   : > { %1793 = sst [smem:[#allocation18_spill]] %s1588_s28 }
  0x57   : > { %382 = sbr.rel (!%p1569_p13) target bundleno = 99 (0x63), region = 56  ;;  %s384_s19 = sand.u32 (%p1569_p13), 1, %s1404_s1  }
  0x58   : > { %s387_s20 = sld [smem:[#allocation5 + %s1408_s0]] (%p1569_p13)  ;;  %s1076_s21 = sshll.u32 (%p1569_p13), %s384_s19, 5 }
  0x59   : > { %s1794_s6 = sld [smem:[#allocation20_spill]] (%p1569_p13)  ;;  %s386_s2 = scalar_lea.vmem (%p1569_p13), [#allocation10], %s1076_s21 }
  0x5e   : > { %s1077_s23 = sshll.u32 %s387_s20, 3 }
  0x5f   : > { %s389_s22 = scalar_lea.vmem %s1794_s6, %s1077_s23 }
  0x60   : > { %v423_v0 = vld [vmem:[%s389_s22] sm:$0xff]  ;;  %v425_v1 = vld [vmem:[%s389_s22 + $0x18] sm:$0xff]  ;;  %v427_v2 = vld [vmem:[%s389_s22 + $0x30] sm:$0xff] }
  0x61   : > { %424 = vst [vmem:[%s386_s2] sm:$0xff] %v423_v0  ;;  %426 = vst [vmem:[%s386_s2 + $0x8] sm:$0xff] %v425_v1  ;;  %v429_v3 = vld [vmem:[%s389_s22 + $0x48] sm:$0xff] }
  0x62   : > { %428 = vst [vmem:[%s386_s2 + $0x10] sm:$0xff] %v427_v2  ;;  %430 = vst [vmem:[%s386_s2 + $0x18] sm:$0xff] %v429_v3 }
  0x63 PF: > { %p1078_p9 = scmp.ge.s32.totalorder %s1408_s0, 1  ;;  %p443_p10 = scmp.lt.s32.totalorder %s1408_s0, 7 }
  0x65   : > { %p444_p11 = pnand %p1078_p9, %p443_p10 }
  0x66   : > { %s450_s3 = sand.u32 (!%p444_p11), 1, %s1400_s13   ;;  %s1783_s25 = sand.u32 (!%p444_p11), 1, %s1392_s29  }
  0x67   : > { %447 = sbr.rel (%p444_p11) target bundleno = 1278 (0x4fe), region = 98  ;;  %s1079_s26 = sshll.u32 (!%p444_p11), %s450_s3, 5 }
  0x68   : > { %s1607_s27 = sshll.u32 (!%p444_p11), %s1783_s25, 3  ;;  %s498_s19 = sld [smem:[#allocation4 + %s1555_s17]] (!%p444_p11) }
  0x69   : > { %s505_s20 = sld [smem:[#allocation5 + %s1555_s17]] (!%p444_p11)  ;;  %s1620_s25 = scalar_lea.vmem (!%p444_p11), [#allocation10], %s1079_s26 }
  0x6a   : > { %s511_s21 = sld [smem:[#allocation6 + %s1555_s17]] (!%p444_p11)  ;;  %s497_s28 = scalar_lea.vmem (!%p444_p11), [#allocation11], %s1607_s27 }
  0x6e   : > { %p499_p12 = scmp.lt.s32.totalorder %s498_s19, 2 }
  0x6f   : > { %p506_p13 = scmp.lt.s32.totalorder %s505_s20, 2 }
  0x70   : > { %s1806_s19 = smov (!%p499_p12, %s498_s19), 2  ;;  %p1082_p0 = scmp.ne.s32.totalorder %s511_s21, 1 }
  0x71   : > { %s1808_s20 = smov (!%p506_p13, %s505_s20), 2  ;;  %s1081_s23 = sshll.u32 %s1806_s19, 3  ;;  %vm516_vm0 = vcmask (!%p1082_p0), 64512   ;;  %v1415_v4 = vmov (!%p1082_p0), 0.0  }
  0x72   : > { %s1615_s2 = scalar_lea.vmem %s1764_s5, %s1081_s23  ;;  %s508_s3 = scalar_lea.vmem %s1766_s7, %s1808_s20  ;;  %517 = vst.msk [vmem:[#allocation2] sm:$0xff] (!%p1082_p0), %vm516_vm0, %v1415_v4  ;;  %518 = vst.msk [vmem:[#allocation2 + $0x8] sm:$0xff] (!%p1082_p0), %vm516_vm0, %v1415_v4 }
  0x73   : > { %515 = sbr.rel (%p1082_p0) target bundleno = 122 (0x7a), region = 106  ;;  %519 = vst.msk [vmem:[#allocation2 + $0x10] sm:$0xff] (!%p1082_p0), %vm516_vm0, %v1415_v4  ;;  %520 = vst.msk [vmem:[#allocation2 + $0x18] sm:$0xff] (!%p1082_p0), %vm516_vm0, %v1415_v4 }
  0x7a PF: > { %s521_s19 = sld [smem:[#allocation8 + %s1555_s17]] }
  0x80   : > { %p1083_p1 = scmp.ne.s32.totalorder %s521_s19, 1 }
  0x81   : > { %s526_s6 = sld [smem:[#allocation4 + %s1555_s17]] (!%p1083_p1)  ;;  %v528_v5 = vlaneseq (!%p1083_p1)  ;;  %v544_v6 = vld [vmem:[%s1620_s25] sm:$0xff] (!%p1083_p1)  ;;  %v546_v7 = vld [vmem:[%s1620_s25 + $0x10] sm:$0xff] (!%p1083_p1)  ;;  %v1416_v12 = vmov (!%p1083_p1), 1.0   ;;  %v545_v13 = vld [vmem:[%s1620_s25 + $0x8] sm:$0xff] (!%p1083_p1)  ;;  %vm637_vm2 = vcmask (!%p1083_p1), 64512  }
  0x82   : > { %525 = sbr.rel (%p1083_p1) target bundleno = 360 (0x168), region = 110  ;;  %1126 = vmatprep.mubr.f32.mxu0 (!%p1083_p1), %v544_v6  ;;  %1129 = vmatprep.mubr.f32.mxu1 (!%p1083_p1), %v546_v7  ;;  %v1085_v10 = vld [vmem:[%s508_s3] ss:$0 sm:$0xff] (!%p1083_p1)  ;;  %v547_v14 = vld [vmem:[%s1620_s25 + $0x18] sm:$0xff] (!%p1083_p1)  ;;  %v541_v15 = vld [vmem:[#allocation2 + $0x8] sm:$0xff] (!%p1083_p1) }
  0x83   : > { %v529_v8 = vshrl.u32 (!%p1083_p1), %v528_v5, 7  ;;  %v543_v16 = vld [vmem:[#allocation2 + $0x18] sm:$0xff] (!%p1083_p1)  ;;  %v540_v17 = vld [vmem:[#allocation2] sm:$0xff] (!%p1083_p1)  ;;  %v542_v18 = vld [vmem:[#allocation2 + $0x10] sm:$0xff] (!%p1083_p1) }
  0x87   : > { %s1084_s26 = sshll.u32 (!%p1083_p1), %s526_s6, 3 }
  0x88   : > { %v530_v9 = vstv (!%p1083_p1), %s1084_s26 }
  0x89   : > { %v531_v11 = vadd.s32 %v530_v9, %v529_v8 }
  0x8b   : > { %vm537_vm1 = vcmp.eq.s32.totalorder %v531_v11, %v1085_v10 }
  0x8c   : > { %1124 = vmatprep.subr.msk.mxu0 %vm537_vm1, %v1416_v12  ;;  %1197 = vmatprep.subr.msk.mxu1 %vm537_vm1, %v1416_v12 }
  0x8d   : > { %1125 = vmatpush3.xpose.msk.msra.mxu0 %vm537_vm1, %v1416_v12  ;;  %1198 = vmatpush3.xpose.msk.msra.mxu1 %vm537_vm1, %v1416_v12 }
  0x90   : > { %1127 = vmatmul.mubr.f32.vlgmr.msra.gmra.mrb[0].mxu0 %v545_v13  ;;  %1130 = vmatmul.mubr.f32.vlgmr.msra.gmra.mrb[0].mxu1 %v547_v14 }
 0x163   : > { %v1128_v19 = vpop.f32.mrb[0].mxu0  ;;  %v1131_v20 = vpop.f32.mrb[0].mxu1 }
 0x164   : > { %v634_v21 = vadd.f32 %v1128_v19, %v541_v15  ;;  %v636_v22 = vadd.f32 %v1131_v20, %v543_v16  ;;  %v614_v23 = vpop.f32.mrb[1].mxu0  ;;  %v624_v24 = vpop.f32.mrb[1].mxu1 }
 0x165   : > { %v633_v25 = vadd.f32 %v614_v23, %v540_v17  ;;  %v635_v26 = vadd.f32 %v624_v24, %v542_v18 }
 0x166   : > { %639 = vst.msk [vmem:[#allocation2 + $0x8] sm:$0xff] %vm637_vm2, %v634_v21  ;;  %641 = vst.msk [vmem:[#allocation2 + $0x18] sm:$0xff] %vm637_vm2, %v636_v22 }
 0x167   : > { %638 = vst.msk [vmem:[#allocation2] sm:$0xff] %vm637_vm2, %v633_v25  ;;  %640 = vst.msk [vmem:[#allocation2 + $0x10] sm:$0xff] %vm637_vm2, %v635_v26 }
 0x168 PF: > { %s642_s25 = sld [smem:[#allocation7 + %s1555_s17]] }
 0x16e   : > { %p1088_p2 = scmp.ne.s32.totalorder %s642_s25, 1 }
 0x16f   : > { %v652_v27 = vld [vmem:[#allocation2] sm:$0xff] (!%p1088_p2)  ;;  %v1417_v28 = vmov (!%p1088_p2), 0.0|0.0   ;;  %v657_v30 = vld [vmem:[%s1768_s9 + $0x8] sm:$0xff] (!%p1088_p2)  ;;  %v658_v33 = vld [vmem:[%s1768_s9 + $0x10] sm:$0xff] (!%p1088_p2)  ;;  %vm1418_vm3 = vmmov (!%p1088_p2), 0   ;;  %v1419_v35 = vmov (!%p1088_p2), 0.0  }
 0x170   : > { %646 = sbr.rel (%p1088_p2) target bundleno = 1252 (0x4e4), region = 114  ;;  %660 = vxpose.xlu0.b32.start [1/4] (short) (narrow) (!%p1088_p2), %v652_v27, 8  ;;  %1173 = vmatprep.subr.bf16.mxu1 (!%p1088_p2), %v1417_v28  ;;  %v656_v29 = vld [vmem:[%s1768_s9] sm:$0xff] (!%p1088_p2)  ;;  %v653_v31 = vld [vmem:[#allocation2 + $0x8] sm:$0xff] (!%p1088_p2)  ;;  %v659_v34 = vld [vmem:[%s1768_s9 + $0x18] sm:$0xff] (!%p1088_p2)  ;;  %vm692_vm4 = vcmask (!%p1088_p2), 261120  }
 0x171   : > { %v1174_v32 = vpack.c.bf16 (!%p1088_p2), %v657_v30, %v656_v29  ;;  %1140 = vmatprep.mubr.msk.f32.mxu1 (!%p1088_p2), %vm1418_vm3, %v1419_v35  ;;  %1185 = vmatprep.subr.bf16.mxu0 (!%p1088_p2), %v1417_v28  ;;  %v1177_v36 = vpack.c.bf16 (!%p1088_p2), %v659_v34, %v658_v33  ;;  %v654_v37 = vld [vmem:[#allocation2 + $0x10] sm:$0xff] (!%p1088_p2)  ;;  %v655_v38 = vld [vmem:[#allocation2 + $0x18] sm:$0xff] (!%p1088_p2)  ;;  %v648_v39 = vld [vmem:[%s1767_s8] sm:$0xff] (!%p1088_p2)  ;;  %vm847_vm5 = vcmask (!%p1088_p2), 523264   ;;  %s878_s25 = sld [smem:[#allocation9]] (!%p1088_p2)  ;;  %s1795_s3 = sld [smem:[#allocation21_spill]] (!%p1088_p2) }
 0x172   : > { %1170 = vmatprep.mubr.msk.f32.mxu0 (!%p1088_p2), %vm1418_vm3, %v1419_v35  ;;  %v649_v40 = vld [vmem:[%s1767_s8 + $0x8] sm:$0xff] (!%p1088_p2)  ;;  %v650_v42 = vld [vmem:[%s1767_s8 + $0x10] sm:$0xff] (!%p1088_p2)  ;;  %v651_v43 = vld [vmem:[%s1767_s8 + $0x18] sm:$0xff] (!%p1088_p2) }
 0x173   : > { %1175 = vmatpush3.bf16.msra.mxu1 (!%p1088_p2), %v1174_v32  ;;  %v1180_v41 = vpack.c.bf16 (!%p1088_p2), %v649_v40, %v648_v39  ;;  %v1183_v45 = vpack.c.bf16 (!%p1088_p2), %v651_v43, %v650_v42  ;;  %v647_v46 = vld [vmem:[%s1615_s2] sm:$0xff] (!%p1088_p2)  ;;  %v884_v61 = vld [vmem:[%s1772_s14 + $0x8] sm:$0xff] (!%p1088_p2)  ;;  %v885_v63 = vld [vmem:[%s1772_s14 + $0x10] sm:$0xff] (!%p1088_p2) }
 0x174   : > { %661 = vxpose.xlu0.b32.cont [2/4] (short) (narrow) (!%p1088_p2), %v653_v31, 8  ;;  %1176 = vmatprep.subr.bf16.mxu1 (!%p1088_p2), %v1417_v28  ;;  %v1091_v50 = vld [vmem:[%s1769_s10] ss:$0 sm:$0xff] (!%p1088_p2)  ;;  %v886_v0 = vld [vmem:[%s1772_s14 + $0x18] sm:$0xff] (!%p1088_p2)  ;;  %v888_v3 = vld [vmem:[%s1772_s14 + $0x28] sm:$0xff] (!%p1088_p2) }
 0x175   : > { %v883_v60 = vld [vmem:[%s1772_s14] sm:$0xff] (!%p1088_p2)  ;;  %v1189_v1 = vpack.c.bf16 (!%p1088_p2), %v886_v0, %v885_v63  ;;  %v889_v5 = vld [vmem:[%s1772_s14 + $0x30] sm:$0xff] (!%p1088_p2)  ;;  %v890_v6 = vld [vmem:[%s1772_s14 + $0x38] sm:$0xff] (!%p1088_p2) }
 0x176   : > { %v1186_v62 = vpack.c.bf16 (!%p1088_p2), %v884_v61, %v883_v60  ;;  %v887_v2 = vld [vmem:[%s1772_s14 + $0x20] sm:$0xff] (!%p1088_p2)  ;;  %v1195_v7 = vpack.c.bf16 (!%p1088_p2), %v890_v6, %v889_v5 }
 0x177   : > { %1178 = vmatpush3.bf16.msra.mxu1 %v1177_v36  ;;  %v1192_v4 = vpack.c.bf16 %v888_v3, %v887_v2  ;;  %v1092_v12 = vld [vmem:[%s1770_s11] ss:$0 sm:$0xff]  ;;  %v880_v16 = vstv %s878_s25 }
 0x178   : > { %662 = vxpose.xlu0.b32.cont [3/4] (short) (narrow) %v654_v37, 8  ;;  %1179 = vmatprep.subr.bf16.mxu1 %v1417_v28  ;;  %v1093_v14 = vld [vmem:[%s1771_s12] ss:$0 sm:$0xff] }
 0x179   : > { %1187 = vmatpush3.bf16.msra.mxu0 %v1186_v62  ;;  %v1094_v20 = vld [vmem:[%s1795_s3] ss:$0 sm:$0xff] }
 0x17a   : > { %1188 = vmatprep.subr.bf16.mxu0 %v1417_v28 }
 0x17c   : > { %663 = vxpose.xlu0.b32.end [4/4] (short) (narrow) %v655_v38, 8 }
 0x17d   : > { %1190 = vmatpush3.bf16.msra.mxu0 %v1189_v1 }
 0x17e   : > { %1191 = vmatprep.subr.bf16.mxu0 %v1417_v28 }
 0x181   : > { %1193 = vmatpush3.bf16.msra.mxu0 %v1192_v4 }
 0x182   : > { %1194 = vmatprep.subr.bf16.mxu0 %v1417_v28 }
 0x185   : > { %1196 = vmatpush3.bf16.msra.mxu0 %v1195_v7 }
 0x1f0   : > { %v676_v44 = vpop.trf.xlu0 }
 0x1f1   : > { %1141 = vmatmul.mubr.msk.f32.vlgmr.msra.gmra.mrb[0].mxu1 %vm692_vm4, %v676_v44 }
 0x1f2   : > { %1181 = vmatpush3.bf16.msra.mxu1 %v1180_v41  ;;  %1151 = vmatprep.mubr.msk.f32.mxu1 %vm1418_vm3, %v1419_v35 }
 0x1f3   : > { %1182 = vmatprep.subr.bf16.mxu1 %v1417_v28 }
 0x1f6   : > { %1184 = vmatpush3.bf16.msra.mxu1 %v1183_v45 }
 0x1f9   : > { %1152 = vmatmul.mubr.msk.f32.vlgmr.msra.gmra.mrb[2].mxu1 %vm692_vm4, %v647_v46 }
 0x2c4   : > { %v762_v47 = vpop.f32.mrb[0].mxu1 }
 0x2c5   : > { %v1142_v48 = vpop.f32.mrb[1].mxu1 }
 0x2cc   : > { %v835_v49 = vpop.f32.mrb[2].mxu1 }
 0x2cd   : > { %v836_v51 = vadd.f32 %v835_v49, %v762_v47  ;;  %v1153_v52 = vpop.f32.mrb[3].mxu1 }
 0x2cf   : > { %v846_v53 = vadd.f32 %v1091_v50, %v836_v51 }
 0x2d1   : > { %v848_v54 = vsel %vm847_vm5, %v846_v53, 0.0 }
 0x2d2   : > { %849 = vadd.xlane.f32.xlu1 %v848_v54 }
 0x35f   : > { %v850_v55 = vpop.xlane.xlu1 %849 }
 0x360   : > { %v852_v56 = vmul.f32 0.015625, %v850_v55 }
 0x362   : > { %v853_v57 = vsub.f32 %v846_v53, %v852_v56 }
 0x364   : > { %v854_v58 = vmul.f32 %v853_v57, %v853_v57 }
 0x366   : > { %v855_v59 = vsel %vm847_vm5, %v854_v58, 0.0 }
 0x367   : > { %856 = vadd.xlane.f32.xlu1 %v855_v59 }
 0x3f4   : > { %v857_v8 = vpop.xlane.xlu1 %856 }
 0x3f5   : > { %v858_v9 = vmul.f32 0.015625, %v857_v8 }
 0x3f7   : > { %v859_v10 = vadd.f32 1e-05, %v858_v9 }
 0x3f9   : > { %1266 = vrsqrt.f32 %v859_v10 }
 0x403   : > { %v1267_v11 = vpop.eup %1266 }
 0x404   : > { %v861_v13 = vmul.f32 %v1267_v11, %v853_v57 }
 0x406   : > { %v869_v15 = vmul.f32 %v1092_v12, %v861_v13 }
 0x408   : > { %v877_v17 = vadd.f32 %v1093_v14, %v869_v15 }
 0x40a   : > { %vm879_vm6 = vcmp.ge.f32.partialorder %v877_v17, 0.0  ;;  %v881_v18 = vmul.f32 %v880_v16, %v877_v17 }
 0x40c   : > { %v882_v19 = vsel %vm879_vm6, %v877_v17, %v881_v18 }
 0x40d   : > { %1171 = vmatmul.mubr.msk.f32.vlgmr.msra.gmra.mrb[0].mxu0 %vm847_vm5, %v882_v19 }
 0x4e0   : > { %v967_v21 = vpop.f32.mrb[0].mxu0 }
 0x4e1   : > { %v968_v22 = vadd.f32 %v1094_v20, %v967_v21  ;;  %v1172_v23 = vpop.f32.mrb[1].mxu0 }
 0x4e3   : > { %971 = vst.msk [vmem:[%s497_s28] sm:$0xff] %vm692_vm4, %v968_v22 }
 0x4e4 PF: > { %s1199_s2 = scalar_select %p1578_p4, [#allocation4], [#allocation13] }
 0x4e5   : > { %s1810_s17 = smov (!%p1578_p4, %s1555_s17), 0  ;;  %s987_s6 = sshll.u32 %s497_s28, 4  ;;  %s1717_s6 = int_to_ptr.vmem [resolvable:$true] %s987_s6 }
 0x4e6   : > { %s980_s19 = sld [smem:[%s1199_s2 + %s1810_s17]]  ;;  %s1796_s23 = sand.u32 1, %s1392_s29  }
 0x4e7   : > { %s973_s15 = scalar_lea.sflag [#allocation12], %s1796_s23  ;;  %s1328_s22 = scalar_lea.vmem %s1717_s6, 128 }
 0x4e8   : > { %p1329_p3 = scmp.ne.s32.totalorder %s1717_s6, %s1328_s22  ;;  %s1420_s17 = smov [#allocation11]  }
 0x4e9   : > { %s1332_s27 = sshll.u32 %s1420_s17, 4  ;;  %s1333_s27 = int_to_ptr.vmem [resolvable:$false] %s1332_s27 }
 0x4ea   : > { %p1330_p5 = pnand %p1329_p3, %p1578_p4  ;;  %s1334_s28 = scalar_lea.vmem %s1333_s27, 256 }
 0x4eb   : > { %p1335_p8 = scmp.lt.s32.totalorder %s1717_s6, %s1333_s27  ;;  %p1336_p9 = scmp.lt.s32.totalorder %s1334_s28, %s1328_s22 }
 0x4ec   : > { %s1097_s26 = sshll.u32 %s980_s19, 7  ;;  %p1331_p7 = pneg %p1330_p5 }
 0x4ed   : > { %s985_s21 = scalar_lea.hbm %s1774_s16, %s1097_s26  ;;  %p1337_p10 = por %p1336_p9, %p1335_p8 }
 0x4ef   : > { %p1338_p11 = pnand %p1337_p10, %p1331_p7 }
 0x4f1   : > { %1341 = shalt.err (!%p1338_p11)
}
 0x4f2   : > { %s1342_s13 = scalar_lea.hbm %s985_s21, 128  ;;  %s1346_s19 = scalar_lea.hbm %s1774_s16, 384 }
 0x4f3   : > { %p1343_p12 = scmp.ne.s32.totalorder %s985_s21, %s1342_s13  ;;  %p1347_p1 = scmp.lt.u32.totalorder %s985_s21, %s1774_s16 }
 0x4f4   : > { %p1348_p2 = scmp.lt.u32.totalorder %s1346_s19, %s1342_s13  ;;  %p1350_p5 = scmp.lt.u32.totalorder %s1342_s13, %s985_s21 }
 0x4f5   : > { %p1344_p13 = pnand %p1343_p12, %p1578_p4 }
 0x4f6   : > { %p1349_p3 = por %p1348_p2, %p1347_p1 }
 0x4f7   : > { %p1345_p0 = pneg %p1344_p13 }
 0x4f8   : > { %p1351_p8 = por %p1350_p5, %p1349_p3 }
 0x4fa   : > { %p1352_p7 = pnand %p1351_p8, %p1345_p0 }
 0x4fc   : > { %1355 = shalt.err (!%p1352_p7)
}
 0x4fd   : > { %1201 = dma.vmem_to_hbm [thread:$0]  (%p1578_p4), %s1717_s6, 128, %s985_s21, %s973_s15  }
 0x4fe PF: > { %p1207_p9 = scmp.ge.s32.totalorder %s1408_s0, 2  ;;  %s999_s23 = sand.u32 1, %s1388_s4  }
 0x4ff   : > { %s1000_s22 = scalar_lea.sflag [#allocation12], %s999_s23 }
 0x500   : > { %p1204_p10 = pnand %p1207_p9, %p1582_p6 }
 0x502   : > { %1383 = dma.done.wait (!%p1204_p10), %s1000_s22, 128  }
 0x503   : > { %1385 = vsyncadd (!%p1204_p10), %s1000_s22, 4294967168  ;;  %s1798_s0 = sld [smem:[#allocation16_spill]]  ;;  %s1799_s17 = sld [smem:[#allocation18_spill]] }
 0x504   : > { %s1800_s4 = smov %s1392_s29  ;;  %s1801_s29 = smov %s1396_s30 }
 0x505   : > { %s1802_s30 = smov %s1591_s18  ;;  %s1803_s13 = smov %s1404_s1 }
 0x509   : > { %p49_p11 = scmp.ge.s32.totalorder %s1798_s0, 8   ;;  %s1804_s1 = smov %s1799_s17 }
 0x50b   :  { %51 = sbr.rel (!%p49_p11) target bundleno = 68 (0x44), region = 160 }
 0x512   :  { %1005 = vsyncpa [#allocation12], 1 }
 0x513   :  { %1007 = vsyncpa [#allocation12 + $0x1], 1 }

</bundles_post_ra>
